<compile_context>
chip_gen: v6e
topology: v6e:2x2x1
jax: 0.10.0
libtpu: 0.0.40
codegen_flags: <defaults>
</compile_context>

<pallas_src>
import functools

import jax
import jax.numpy as jnp
from jax.experimental import pallas as pl
from jax.experimental.pallas import tpu as pltpu


_LANES = 128
_SUBLANES = 8


def _round_up(n, m):
    return ((n + m - 1) // m) * m


def _to_2d(a):
    """Reshape to a 2-D slab, lane-dense (last dim 128) when possible."""
    total = a.size
    if total % _LANES == 0:
        return a.reshape(total // _LANES, _LANES)
    return a.reshape(1, total)


# --------------------------- KLD kernel (tiny latents) -----------------------
def _kld_kernel(mu_ref, sd_ref, kld_ref):
    mu = mu_ref[...].astype(jnp.float32)
    sd = sd_ref[...].astype(jnp.float32)
    var = sd * sd
    log_var = jnp.log(jnp.maximum(var, jnp.float32(1e-10)))  # _torch_log(std**2)
    term = 1.0 + log_var - mu * mu - var
    kld_ref[0, 0] = jnp.float32(-0.5) * jnp.mean(term)


def _kld(mean, std):
    m2d = _to_2d(mean)
    s2d = _to_2d(std)
    vmem = pl.BlockSpec(memory_space=pltpu.MemorySpace.VMEM)
    smem = pl.BlockSpec(memory_space=pltpu.MemorySpace.SMEM)
    kld = pl.pallas_call(
        _kld_kernel,
        out_shape=jax.ShapeDtypeStruct((1, 1), jnp.float32),
        in_specs=[vmem, vmem],
        out_specs=smem,
    )(m2d, s2d)
    return kld[0, 0]


# ------------------- small-path MSE: single full-block kernel ----------------
def _mse_small_kernel(x_ref, y_ref, mse_ref, *, scale):
    d = x_ref[...].astype(jnp.float32) - y_ref[...].astype(jnp.float32)
    mse_ref[0, 0] = jnp.float32(scale) * jnp.sum(d * d)


def _mse_small(x, y, weight_mse):
    n = x.size
    x2d = _to_2d(x)
    y2d = _to_2d(y)
    vmem = pl.BlockSpec(memory_space=pltpu.MemorySpace.VMEM)
    smem = pl.BlockSpec(memory_space=pltpu.MemorySpace.SMEM)
    kernel = functools.partial(_mse_small_kernel, scale=float(weight_mse) / n)
    mse = pl.pallas_call(
        kernel,
        out_shape=jax.ShapeDtypeStruct((1, 1), jnp.float32),
        in_specs=[vmem, vmem],
        out_specs=smem,
    )(x2d, y2d)
    return mse[0, 0]


# -------------- large-path MSE: tiled, pipelined streaming reduction ---------
def _mse_tiled_kernel(x_ref, y_ref, o_ref, acc_ref, *, scale):
    k = pl.program_id(1)

    @pl.when(k == 0)
    def _init():
        acc_ref[...] = jnp.zeros_like(acc_ref)

    d = x_ref[...].astype(jnp.float32) - y_ref[...].astype(jnp.float32)
    # Per-lane partial sums (cheap sublane reduce on the VPU/XLU); the final
    # lane reduce happens once in the wrapper on a tiny (nc, 128) array.
    acc_ref[...] += jnp.sum(d * d, axis=0, keepdims=True)

    @pl.when(k == pl.num_programs(1) - 1)
    def _finalize():
        o_ref[...] = jnp.broadcast_to(
            acc_ref[...] * jnp.float32(scale), o_ref.shape)


def _mse_tiled(x, y, weight_mse, tile_rows):
    n = x.size
    rows = pl.cdiv(n, _LANES)

    # Two partial slabs so a 2-TC chip (v7x) shards the "parallel" axis across
    # both cores; on single-TC chips (v5e/v6e) it is just a length-2 loop.
    nc = 2 if rows >= 2 * _SUBLANES else 1
    tr = _round_up(min(int(tile_rows), pl.cdiv(rows, nc)), _SUBLANES)
    rows_padded = _round_up(rows, tr * nc)
    k_steps = rows_padded // (tr * nc)

    # Pad x and y with the SAME value (0) so padding contributes 0 to the sum
    # of squared differences; the mean divides by the true element count `n`.
    pad = rows_padded * _LANES - n
    xf = x.reshape(-1)
    yf = y.reshape(-1)
    if pad:
        xf = jnp.pad(xf, (0, pad))
        yf = jnp.pad(yf, (0, pad))
    xf = xf.reshape(rows_padded, _LANES)
    yf = yf.reshape(rows_padded, _LANES)

    kernel = functools.partial(_mse_tiled_kernel, scale=float(weight_mse) / n)

    out = pl.pallas_call(
        kernel,
        out_shape=jax.ShapeDtypeStruct((nc, _SUBLANES, _LANES), jnp.float32),
        grid_spec=pltpu.PrefetchScalarGridSpec(
            num_scalar_prefetch=0,
            grid=(nc, k_steps),
            in_specs=[
                pl.BlockSpec((tr, _LANES), lambda c, k: (c * k_steps + k, 0)),
                pl.BlockSpec((tr, _LANES), lambda c, k: (c * k_steps + k, 0)),
            ],
            out_specs=pl.BlockSpec((1, _SUBLANES, _LANES),
                                   lambda c, k: (c, 0, 0)),
            scratch_shapes=[pltpu.VMEM((1, _LANES), jnp.float32)],
        ),
        compiler_params=pltpu.CompilerParams(
            dimension_semantics=("parallel", "arbitrary")),
    )(xf, yf)

    # Row 0 of each (8, 128) output slab holds that core's scaled lane partials.
    return jnp.sum(out[:, 0, :])


# ------------------------------------ API ------------------------------------
def vae_loss(x, y, mean, std, weight_mse=1000.0, weight_ssim=0.0, *,
             tile_rows=2048, small_bytes=1 << 20):
    if weight_ssim != 0.0:
        # TODO(synk): SSIMLoss is not defined in the reference module; only the
        # default weight_ssim == 0.0 case is supported (term is exactly 0).
        raise NotImplementedError(
            "SSIM term not implemented (SSIMLoss undefined in reference).")

    nbytes = x.size * x.dtype.itemsize
    if nbytes <= small_bytes:
        mse = _mse_small(x, y, weight_mse)
    else:
        mse = _mse_tiled(x, y, weight_mse, tile_rows)

    kld = _kld(mean, std)
    ssim = jnp.float32(0.0)  # weight_ssim (= 0.0) * SSIMLoss(x, y)
    return mse, ssim, kld


def _reference(x, y, mean, std, weight_mse=1000.0):
    xf = x.astype(jnp.float32)
    yf = y.astype(jnp.float32)
    mse = weight_mse * jnp.mean((xf - yf) ** 2)
    ssim = jnp.float32(0.0)
    mu = mean.astype(jnp.float32)
    var = std.astype(jnp.float32) ** 2
    kld = -0.5 * jnp.mean(1.0 + jnp.log(jnp.maximum(var, 1e-10)) - mu ** 2 - var)
    return mse, ssim, kld


if __name__ == "__main__":
    key = jax.random.PRNGKey(0)
    kx, ky, km, ks = jax.random.split(key, 4)

    # --- small path: NCHW = (2, 4, 16, 16), latents (2, 32) ------------------
    x = jax.random.normal(kx, (2, 4, 16, 16), dtype=jnp.float32)
    y = jax.random.normal(ky, (2, 4, 16, 16), dtype=jnp.float32)
    mean = jax.random.normal(km, (2, 32), dtype=jnp.float32)
    std = jax.nn.softplus(jax.random.normal(ks, (2, 32), dtype=jnp.float32))

    mse, ssim, kld = vae_loss(x, y, mean, std)
    jax.block_until_ready((mse, ssim, kld))
    mse_r, ssim_r, kld_r = _reference(x, y, mean, std)
    assert jnp.allclose(mse, mse_r, rtol=1e-5, atol=1e-5), (mse, mse_r)
    assert jnp.allclose(ssim, ssim_r, rtol=1e-5, atol=1e-5), (ssim, ssim_r)
    assert jnp.allclose(kld, kld_r, rtol=1e-5, atol=1e-5), (kld, kld_r)

    # --- tiled/pipelined path: NCHW = (2, 4, 256, 256) (2 MiB), latents (2,64)
    kx2, ky2, km2, ks2 = jax.random.split(jax.random.PRNGKey(0), 4)
    x2 = jax.random.normal(kx2, (2, 4, 256, 256), dtype=jnp.float32)
    y2 = jax.random.normal(ky2, (2, 4, 256, 256), dtype=jnp.float32)
    mean2 = jax.random.normal(km2, (2, 64), dtype=jnp.float32)
    std2 = jax.nn.softplus(jax.random.normal(ks2, (2, 64), dtype=jnp.float32))

    mse2, ssim2, kld2 = vae_loss(x2, y2, mean2, std2, tile_rows=256)
    jax.block_until_ready((mse2, ssim2, kld2))
    mse2_r, ssim2_r, kld2_r = _reference(x2, y2, mean2, std2)
    assert jnp.allclose(mse2, mse2_r, rtol=1e-4, atol=1e-4), (mse2, mse2_r)
    assert jnp.allclose(ssim2, ssim2_r, rtol=1e-5, atol=1e-5), (ssim2, ssim2_r)
    assert jnp.allclose(kld2, kld2_r, rtol=1e-5, atol=1e-5), (kld2, kld2_r)

    # --- tiled path with ragged size (exercises zero-padding), odd latents ---
    kx3, ky3, km3, ks3 = jax.random.split(jax.random.PRNGKey(1), 4)
    x3 = jax.random.normal(kx3, (1, 3, 300, 300), dtype=jnp.float32)
    y3 = jax.random.normal(ky3, (1, 3, 300, 300), dtype=jnp.float32)
    mean3 = jax.random.normal(km3, (2, 30), dtype=jnp.float32)
    std3 = jax.nn.softplus(jax.random.normal(ks3, (2, 30), dtype=jnp.float32))

    mse3, ssim3, kld3 = vae_loss(x3, y3, mean3, std3,
                                 tile_rows=256, small_bytes=0)
    jax.block_until_ready((mse3, ssim3, kld3))
    mse3_r, ssim3_r, kld3_r = _reference(x3, y3, mean3, std3)
    assert jnp.allclose(mse3, mse3_r, rtol=1e-4, atol=1e-4), (mse3, mse3_r)
    assert jnp.allclose(ssim3, ssim3_r, rtol=1e-5, atol=1e-5), (ssim3, ssim3_r)
    assert jnp.allclose(kld3, kld3_r, rtol=1e-5, atol=1e-5), (kld3, kld3_r)

    print("KERNEL_OK")
</pallas_src>

<mosaic_0001>
module attributes {stable_mosaic.version = 11 : i64} {
  func.func @_mse_small_kernel(%arg0: memref<16x128xf32, #tpu.memory_space<vmem>>, %arg1: memref<16x128xf32, #tpu.memory_space<vmem>>, %arg2: memref<1x1xf32, #tpu.memory_space<smem>>) attributes {dimension_semantics = [], scalar_prefetch = 0 : i64, scratch_operands = 0 : i64, tpu.core_type = #tpu.core_type<tc>} {
    %c0 = arith.constant 0 : index
    %c0_0 = arith.constant 0 : index
    %0 = vector.load %arg0[%c0, %c0_0] : memref<16x128xf32, #tpu.memory_space<vmem>>, vector<16x128xf32>
    %c0_1 = arith.constant 0 : index
    %c0_2 = arith.constant 0 : index
    %1 = vector.load %arg1[%c0_1, %c0_2] : memref<16x128xf32, #tpu.memory_space<vmem>>, vector<16x128xf32>
    %2 = arith.subf %0, %1 : vector<16x128xf32>
    %3 = arith.mulf %2, %2 : vector<16x128xf32>
    %4 = vector.shape_cast %3 : vector<16x128xf32> to vector<1x16x128xf32>
    %cst = arith.constant dense<0.000000e+00> : vector<1xf32>
    %5 = vector.multi_reduction <add>, %4, %cst [1, 2] : vector<1x16x128xf32> to vector<1xf32>
    %6 = vector.shape_cast %5 : vector<1xf32> to vector<1x1x1xf32>
    %7 = vector.extract %6[0, 0, 0] : f32 from vector<1x1x1xf32>
    %cst_3 = arith.constant 0.48828125 : f32
    %8 = arith.mulf %cst_3, %7 : f32
    %c0_4 = arith.constant 0 : index
    %c0_5 = arith.constant 0 : index
    %9 = memref.load %arg2[%c0_4, %c0_5] : memref<1x1xf32, #tpu.memory_space<smem>>
    memref.store %8, %arg2[%c0_4, %c0_5] : memref<1x1xf32, #tpu.memory_space<smem>>
    return
  }
}

</mosaic_0001>

<bundles_post_ra>
// kernel: tpu_custom_call.1
= control target key start
LH: loop header
LB: loop body
LE: loop exit
PB: predicated region body
PF: predicated region fallthrough
CT: control target
= control target key end

     0   :  { %7 = vsyncpa [#allocation3], 0  ;;  %s166_s0 = inlined_call_operand.hbm [shape: f32[16,128], index: 0, kind: input, shape index: {}]   ;;  %s167_s1 = inlined_call_operand.hbm [shape: f32[16,128], index: 1, kind: input, shape index: {}]   ;;  %s168_s2 = inlined_call_operand.hbm [shape: f32[1,1], index: 2, kind: output, shape index: {}]  }
   0x1   :  { %8 = vsyncpa [#allocation6], 0 }
   0x2   :  { %9 = vsyncpa [#allocation4], 0  ;;  %s137_s9 = smov [#allocation2]  }
   0x3   :  { %s15_s10 = sshll.u32 %s137_s9, 4  ;;  %s16_s10 = int_to_ptr.vmem [resolvable:$true] %s15_s10 }
   0x4   :  { %s91_s11 = scalar_lea.vmem %s16_s10, 256  ;;  %p96_p1 = scmp.lt.s32.totalorder %s16_s10, %s16_s10 }
   0x5   :  { %p92_p0 = scmp.ne.s32.totalorder %s16_s10, %s91_s11  ;;  %p97_p2 = scmp.lt.s32.totalorder %s91_s11, %s91_s11 }
   0x7   :  { %p98_p3 = por %p97_p2, %p96_p1 }
   0x9   :  { %p99_p4 = pnand %p98_p3, %p92_p0 }
   0xb   :  { %102 = shalt.err (!%p99_p4)
}
   0xc   :  { %s138_s12 = smov 128   ;;  %s139_s13 = smov 8  }
   0xd   :  { %21 = dma.hbm_to_vmem [thread:$0]  %s166_s0, 256, %s16_s10, [#allocation3], %s138_s12, %s138_s12, %s139_s13  }
   0xe   :  { %s140_s16 = smov [#allocation5]  }
   0xf   :  { %s27_s17 = sshll.u32 %s140_s16, 4  ;;  %s28_s17 = int_to_ptr.vmem [resolvable:$true] %s27_s17 }
  0x10   :  { %s111_s18 = scalar_lea.vmem %s28_s17, 256  ;;  %p116_p6 = scmp.lt.s32.totalorder %s28_s17, %s28_s17 }
  0x11   :  { %p112_p5 = scmp.ne.s32.totalorder %s28_s17, %s111_s18  ;;  %p117_p7 = scmp.lt.s32.totalorder %s111_s18, %s111_s18 }
  0x13   :  { %p118_p8 = por %p117_p7, %p116_p6 }
  0x15   :  { %p119_p9 = pnand %p118_p8, %p112_p5 }
  0x17   :  { %122 = shalt.err (!%p119_p9)
}
  0x18   :  { %33 = dma.hbm_to_vmem [thread:$0]  %s167_s1, 256, %s28_s17, [#allocation6], %s138_s12, %s138_s12, %s139_s13  }
  0x19   :  { %131 = dma.done.wait [#allocation3], 256  }
  0x1a   :  { %132 = vsyncadd [#allocation3], 4294967040 }
  0x1b   :  { %133 = dma.done.wait [#allocation6], 256  }
  0x1c   :  { %134 = vsyncadd [#allocation6], 4294967040  ;;  %v40_v0 = vld [vmem:[#allocation2] sm:$0xff]  ;;  %v41_v1 = vld [vmem:[#allocation2 + $0x8] sm:$0xff]  ;;  %s141_s21 = smov [#allocation7]  }
  0x1d   :  { %v42_v2 = vld [vmem:[#allocation5] sm:$0xff]  ;;  %v43_v3 = vld [vmem:[#allocation5 + $0x8] sm:$0xff] }
  0x1e   :  { %v44_v4 = vsub.f32 %v40_v0, %v42_v2  ;;  %v45_v5 = vsub.f32 %v41_v1, %v43_v3 }
  0x20   :  { %v46_v6 = vmul.f32 %v44_v4, %v44_v4  ;;  %v47_v7 = vmul.f32 %v45_v5, %v45_v5 }
  0x22   :  { %v48_v8 = vadd.f32 %v47_v7, %v46_v6 }
  0x24   :  { %49 = vadd.xlane.f32.xlu0 %v48_v8 }
  0xad   :  { %v50_v9 = vpop.xlane.xlu0 %49 }
  0xae   :  { %v51_v10 = vrot.slane %v50_v9, 4 }
  0xb0   :  { %v52_v11 = vadd.f32 %v51_v10, %v50_v9 }
  0xb2   :  { %v53_v12 = vrot.slane %v52_v11, 2 }
  0xb4   :  { %v54_v13 = vadd.f32 %v53_v12, %v52_v11 }
  0xb6   :  { %v55_v14 = vrot.slane %v54_v13, 1 }
  0xb8   :  { %v56_v15 = vadd.f32 %v55_v14, %v54_v13 }
  0xba   :  { %76 = vpush %v56_v15 }
  0xeb   :  { %s77_s0 = spop %76 }
  0xec   :  { %s58_s1 = smul.f32 0.48828125, %s77_s0 }
  0xee   :  { %60 = sst [smem:[#allocation7]] %s58_s1 }
  0xef   :  { %68 = dma.smem_to_hbm %s141_s21, 16, %s168_s2, [#allocation4]  }
  0xf0   :  { %135 = dma.done.wait [#allocation4], 16  }
  0xf1   :  { %136 = vsyncadd [#allocation4], 4294967280 }
  0xf2   :  { %72 = sfence }
  0xf3   :  { %73 = vsyncpa [#allocation3], 1 }
  0xf4   :  { %74 = vsyncpa [#allocation6], 1 }
  0xf5   :  { %75 = vsyncpa [#allocation4], 1 }

</bundles_post_ra>
